<compile_context>
chip_gen: v6e
topology: v6e:2x2x1
jax: 0.10.0
libtpu: 0.0.40
codegen_flags: <defaults>
</compile_context>

<pallas_src>
import functools

import jax
import jax.numpy as jnp
from jax.experimental import pallas as pl
from jax.experimental.pallas import tpu as pltpu


def _repr_kernel(x_ref, w_ref, b_ref, o_ref, *, compute_dtype):
    # Cast the streamed tile to the MXU dtype in VMEM (VPU op) — HBM only ever
    # sees x in its native dtype.  Matmul accumulates in f32 on the MXU; the
    # bias-add rides the VPU slot and the tanh the EUP slot, so they co-issue.
    x = x_ref[...].astype(compute_dtype)
    y = jnp.dot(x, w_ref[...], preferred_element_type=jnp.float32)
    o_ref[...] = jnp.tanh(y + b_ref[...]).astype(o_ref.dtype)


def _round_up(n: int, m: int) -> int:
    return pl.cdiv(n, m) * m


def repr_forward(x, w, b, *, block_b: int = 8192, compute_dtype=None,
                 out_dtype=None):
    """tanh(x @ w + b).

    x: (B, obs_dim) activations, w: (obs_dim, hidden) weight (pre-transposed
    from nn.Linear's (hidden, obs_dim) layout), b: (hidden,) or (1, hidden).

    compute_dtype: MXU input dtype (x is cast in-kernel; default = x.dtype).
    out_dtype: output dtype (default = x.dtype; pass bf16 to halve out bytes).
    """
    B, obs_dim = x.shape
    hidden = w.shape[1]

    compute_dtype = jnp.dtype(x.dtype if compute_dtype is None else compute_dtype)
    out_dtype = jnp.dtype(x.dtype if out_dtype is None else out_dtype)

    b = jnp.asarray(b).reshape(1, hidden).astype(jnp.float32)
    w = w.astype(compute_dtype)  # tiny resident operand: one-time boundary cast

    x_bytes = jnp.dtype(x.dtype).itemsize
    out_bytes = out_dtype.itemsize
    # Sublane packing of the streamed input: 8 rows/vreg for 32-bit, 16 for bf16.
    sub = 8 if x_bytes >= 4 else 32 // x_bytes

    # Batch tile: as large as possible (amortize per-step pipeline overhead)
    # but keep the double-buffered x/out tiles under a v5e-safe VMEM budget
    # (v5e default scoped VMEM is 16 MiB; v6e/v7x have more headroom).
    vmem_budget = 12 * 1024 * 1024
    row_bytes = 2 * (obs_dim * x_bytes + hidden * out_bytes)  # double-buffered
    tb_vmem = max(sub, (vmem_budget // row_bytes) // sub * sub)
    tb = min(block_b, tb_vmem, _round_up(B, sub))
    n_tiles = pl.cdiv(B, tb)
    # v7x has 2 TensorCores: a large batch that fits a single grid step would
    # pin all work on one TC, so split it in two (neutral on 1-TC v5e/v6e).
    if n_tiles == 1 and B >= 2048:
        tb = max(sub, _round_up(pl.cdiv(B, 2), sub))
        n_tiles = pl.cdiv(B, tb)

    cost = pl.CostEstimate(
        flops=2 * B * obs_dim * hidden,
        transcendentals=B * hidden,
        bytes_accessed=(B * obs_dim * x_bytes
                        + obs_dim * hidden * compute_dtype.itemsize
                        + hidden * 4
                        + B * hidden * out_bytes),
    )

    kernel = functools.partial(_repr_kernel, compute_dtype=compute_dtype)

    # Note: the last grid step may be a partial block — its extra rows read
    # whatever is resident in the VMEM buffer (possibly inf/NaN), which is safe
    # because the matmul is row-independent and OOB writes are masked.
    return pl.pallas_call(
        kernel,
        out_shape=jax.ShapeDtypeStruct((B, hidden), out_dtype),
        grid_spec=pltpu.PrefetchScalarGridSpec(
            num_scalar_prefetch=0,
            grid=(n_tiles,),
            in_specs=[
                pl.BlockSpec((tb, obs_dim), lambda i: (i, 0)),     # streamed x
                pl.BlockSpec((obs_dim, hidden), lambda i: (0, 0)),  # resident W
                pl.BlockSpec((1, hidden), lambda i: (0, 0)),        # resident b
            ],
            out_specs=pl.BlockSpec((tb, hidden), lambda i: (i, 0)),
        ),
        compiler_params=pltpu.CompilerParams(
            dimension_semantics=("parallel",),
        ),
        cost_estimate=cost,
    )(x, w, b)


if __name__ == "__main__":
    # Small shapes consistent with the module: CFG.hidden = 128, obs_dim = 64.
    OBS_DIM, HIDDEN = 64, 128

    key = jax.random.PRNGKey(0)
    kx, kw, kb, kx2 = jax.random.split(key, 4)

    # PyTorch nn.Linear default init: U(-1/sqrt(fan_in), 1/sqrt(fan_in)).
    bound = 1.0 / (OBS_DIM ** 0.5)
    w = jax.random.uniform(kw, (OBS_DIM, HIDDEN), jnp.float32, -bound, bound)
    b = jax.random.uniform(kb, (1, HIDDEN), jnp.float32, -bound, bound)

    # --- test 1: production-like tiny batch, f32 path, tight tolerance ---
    B1 = 8
    x1 = jax.random.normal(kx, (B1, OBS_DIM), jnp.float32)
    out1 = repr_forward(x1, w, b)
    jax.block_until_ready(out1)
    ref1 = jnp.tanh(x1 @ w + b)
    assert out1.shape == (B1, HIDDEN)
    assert out1.dtype == jnp.float32
    assert jnp.allclose(out1, ref1, atol=1e-5, rtol=1e-5)

    # --- test 2: ragged multi-tile batch (partial last block), bf16 MXU path,
    #             bf16 output (memory-bound config), no pad/slice round trips ---
    B2 = 40
    x2 = jax.random.normal(kx2, (B2, OBS_DIM), jnp.float32)
    out2 = repr_forward(x2, w, b, block_b=16,
                        compute_dtype=jnp.bfloat16, out_dtype=jnp.bfloat16)
    jax.block_until_ready(out2)
    ref2 = jnp.tanh(x2 @ w + b)
    assert out2.shape == (B2, HIDDEN)
    assert out2.dtype == jnp.bfloat16
    assert jnp.allclose(out2.astype(jnp.float32), ref2, atol=2e-2, rtol=2e-2)

    print("KERNEL_OK")
</pallas_src>

<mosaic_0001>
module attributes {stable_mosaic.version = 11 : i64} {
  func.func @_repr_kernel(%arg0: i32, %arg1: memref<8x64xf32, #tpu.memory_space<vmem>>, %arg2: memref<64x128xf32, #tpu.memory_space<vmem>>, %arg3: memref<1x128xf32, #tpu.memory_space<vmem>>, %arg4: memref<8x128xf32, #tpu.memory_space<vmem>>) attributes {dimension_semantics = [#tpu.dimension_semantics<parallel>], iteration_bounds = array<i64: 1>, scalar_prefetch = 0 : i64, scratch_operands = 0 : i64, tpu.core_type = #tpu.core_type<tc>, window_params = [{transform_indices = @transform_0, window_bounds = array<i64: 8, 64>}, {pipeline_mode = #tpu.pipeline_mode<synchronous>, transform_indices = @transform_1, window_bounds = array<i64: 64, 128>}, {pipeline_mode = #tpu.pipeline_mode<synchronous>, transform_indices = @transform_2, window_bounds = array<i64: 1, 128>}, {transform_indices = @transform_3, window_bounds = array<i64: 8, 128>}]} {
    %c0 = arith.constant 0 : index
    %c0_0 = arith.constant 0 : index
    %0 = vector.load %arg1[%c0, %c0_0] : memref<8x64xf32, #tpu.memory_space<vmem>>, vector<8x64xf32>
    %c0_1 = arith.constant 0 : index
    %c0_2 = arith.constant 0 : index
    %1 = vector.load %arg2[%c0_1, %c0_2] : memref<64x128xf32, #tpu.memory_space<vmem>>, vector<64x128xf32>
    %cst = arith.constant dense<0.000000e+00> : vector<8x128xf32>
    %2 = tpu.matmul %0, %1, %cst {dimension_numbers = #tpu.dot_dimension_numbers<[1], [0], [0], [1], [0, 0, 1, 1], [], []>} : vector<8x64xf32>, vector<64x128xf32>, vector<8x128xf32> -> vector<8x128xf32>
    %c0_3 = arith.constant 0 : index
    %c0_4 = arith.constant 0 : index
    %3 = vector.load %arg3[%c0_3, %c0_4] : memref<1x128xf32, #tpu.memory_space<vmem>>, vector<1x128xf32>
    %4 = vector.broadcast %3 : vector<1x128xf32> to vector<8x128xf32>
    %5 = arith.addf %2, %4 : vector<8x128xf32>
    %6 = math.tanh %5 : vector<8x128xf32>
    %c0_5 = arith.constant 0 : index
    %c0_6 = arith.constant 0 : index
    %7 = vector.load %arg4[%c0_5, %c0_6] : memref<8x128xf32, #tpu.memory_space<vmem>>, vector<8x128xf32>
    tpu.vector_store %arg4[%c0_5, %c0_6], %6 {strides = array<i32>} : memref<8x128xf32, #tpu.memory_space<vmem>>, vector<8x128xf32>,
    return
  }
  func.func @transform_0(%arg0: i32) -> (i32, i32) {
    %c0_i32 = arith.constant 0 : i32
    %c0_i32_0 = arith.constant 0 : i32
    return %arg0, %c0_i32 : i32, i32
  }
  func.func @transform_1(%arg0: i32) -> (i32, i32) {
    %c0_i32 = arith.constant 0 : i32
    %c0_i32_0 = arith.constant 0 : i32
    %c0_i32_1 = arith.constant 0 : i32
    return %c0_i32, %c0_i32_0 : i32, i32
  }
  func.func @transform_2(%arg0: i32) -> (i32, i32) {
    %c0_i32 = arith.constant 0 : i32
    %c0_i32_0 = arith.constant 0 : i32
    %c0_i32_1 = arith.constant 0 : i32
    return %c0_i32, %c0_i32_0 : i32, i32
  }
  func.func @transform_3(%arg0: i32) -> (i32, i32) {
    %c0_i32 = arith.constant 0 : i32
    %c0_i32_0 = arith.constant 0 : i32
    return %arg0, %c0_i32 : i32, i32
  }
}

</mosaic_0001>

<bundles_post_ra>
// kernel: tpu_custom_call.1
= control target key start
LH: loop header
LB: loop body
LE: loop exit
PB: predicated region body
PF: predicated region fallthrough
CT: control target
= control target key end

     0   :  { %8 = vsyncpa [#allocation3], 0  ;;  %s293_s0 = inlined_call_operand.hbm [shape: f32[8,64], index: 0, kind: input, shape index: {}]   ;;  %s294_s1 = inlined_call_operand.hbm [shape: f32[64,128], index: 1, kind: input, shape index: {}]   ;;  %s295_s2 = inlined_call_operand.vmem [shape: f32[1,128], index: 2, kind: input, shape index: {}]   ;;  %s296_s3 = inlined_call_operand.hbm [shape: f32[8,128], index: 3, kind: output, shape index: {}]  }
   0x1   :  { %9 = vsyncpa [#allocation6], 0 }
   0x2   :  { %10 = vsyncpa [#allocation4], 0  ;;  %s254_s12 = smov [#allocation2]   ;;  %s255_s14 = smov [#allocation5]  }
   0x3   :  { %s17_s13 = sshll.u32 %s254_s12, 4  ;;  %s26_s15 = sshll.u32 %s255_s14, 4  ;;  %s18_s13 = int_to_ptr.vmem [resolvable:$true] %s17_s13  ;;  %s27_s15 = int_to_ptr.vmem [resolvable:$true] %s26_s15 }
   0x4   :  { %s196_s16 = scalar_lea.vmem %s18_s13, 128  ;;  %p201_p1 = scmp.lt.s32.totalorder %s18_s13, %s18_s13 }
   0x5   :  { %p197_p0 = scmp.ne.s32.totalorder %s18_s13, %s196_s16  ;;  %p202_p2 = scmp.lt.s32.totalorder %s196_s16, %s196_s16 }
   0x7   :  { %p203_p3 = por %p202_p2, %p201_p1 }
   0x9   :  { %p204_p4 = pnand %p203_p3, %p197_p0 }
   0xb   :  { %207 = shalt.err (!%p204_p4)
}
   0xc   :  { %20 = dma.hbm_to_vmem [thread:$0]  %s293_s0, 128, %s18_s13, [#allocation3]  }
   0xd   :  { %s216_s19 = scalar_lea.vmem %s27_s15, 1024  ;;  %p221_p6 = scmp.lt.s32.totalorder %s27_s15, %s27_s15 }
   0xe   :  { %p217_p5 = scmp.ne.s32.totalorder %s27_s15, %s216_s19  ;;  %p222_p7 = scmp.lt.s32.totalorder %s216_s19, %s216_s19 }
  0x10   :  { %p223_p8 = por %p222_p7, %p221_p6 }
  0x12   :  { %p224_p9 = pnand %p223_p8, %p217_p5 }
  0x14   :  { %227 = shalt.err (!%p224_p9)
}
  0x15   :  { %s256_s20 = smov 128   ;;  %s257_s21 = smov 8  }
  0x16   :  { %32 = dma.hbm_to_vmem [thread:$0]  %s294_s1, 1024, %s27_s15, [#allocation6], %s256_s20, %s256_s20, %s257_s21  }
  0x17   :  { %248 = dma.done.wait [#allocation3], 128  }
  0x18   :  { %249 = vsyncadd [#allocation3], 4294967168 }
  0x19   :  { %250 = dma.done.wait [#allocation6], 1024  }
  0x1a   :  { %251 = vsyncadd [#allocation6], 4294966272  ;;  %v258_v0 = vmov 0.0   ;;  %vm259_vm0 = vmmov 0   ;;  %v49_v1 = vld [vmem:[#allocation5 + $0x38] sm:$0xff]  ;;  %v48_v2 = vld [vmem:[#allocation5 + $0x30] sm:$0xff] }
  0x1b   :  { %160 = vmatprep.subr.mxu0 %v258_v0  ;;  %176 = vmatprep.mubr.msk.f32.mxu0 %vm259_vm0, %v258_v0  ;;  %v47_v3 = vld [vmem:[#allocation5 + $0x28] sm:$0xff]  ;;  %v46_v4 = vld [vmem:[#allocation5 + $0x20] sm:$0xff]  ;;  %v45_v5 = vld [vmem:[#allocation5 + $0x18] sm:$0xff]  ;;  %vm57_vm1 = vcmask 523264   ;;  %s260_s24 = smov [#allocation7]  }
  0x1c   :  { %161 = vmatpush3.msra.mxu0 %v49_v1  ;;  %v44_v6 = vld [vmem:[#allocation5 + $0x10] sm:$0xff]  ;;  %v43_v7 = vld [vmem:[#allocation5 + $0x8] sm:$0xff]  ;;  %v42_v8 = vld [vmem:[#allocation5] sm:$0xff]  ;;  %s139_s25 = sshll.u32 %s260_s24, 4  ;;  %s140_s25 = int_to_ptr.vmem [resolvable:$true] %s139_s25 }
  0x1d   :  { %162 = vmatprep.subr.mxu0 %v258_v0  ;;  %v41_v9 = vld [vmem:[#allocation2] sm:$0xff]  ;;  %s228_s26 = scalar_lea.vmem %s140_s25, 128  ;;  %p233_p11 = scmp.lt.s32.totalorder %s140_s25, %s140_s25 }
  0x1e   :  { %163 = vmatpush3.msra.mxu0 %v48_v2  ;;  %v149_v10 = vld [vmem:[%s295_s2] ss:$0 sm:$0xff]  ;;  %p229_p10 = scmp.ne.s32.totalorder %s140_s25, %s228_s26  ;;  %p234_p12 = scmp.lt.s32.totalorder %s228_s26, %s228_s26 }
  0x1f   :  { %164 = vmatprep.subr.mxu0 %v258_v0 }
  0x20   :  { %165 = vmatpush3.msra.mxu0 %v47_v3  ;;  %p235_p13 = por %p234_p12, %p233_p11 }
  0x21   :  { %166 = vmatprep.subr.mxu0 %v258_v0 }
  0x22   :  { %167 = vmatpush3.msra.mxu0 %v46_v4  ;;  %p236_p0 = pnand %p235_p13, %p229_p10 }
  0x23   :  { %168 = vmatprep.subr.mxu0 %v258_v0 }
  0x24   :  { %169 = vmatpush3.msra.mxu0 %v45_v5 }
  0x25   :  { %170 = vmatprep.subr.mxu0 %v258_v0 }
  0x26   :  { %171 = vmatpush3.msra.mxu0 %v44_v6 }
  0x27   :  { %172 = vmatprep.subr.mxu0 %v258_v0 }
  0x28   :  { %173 = vmatpush3.msra.mxu0 %v43_v7 }
  0x29   :  { %174 = vmatprep.subr.mxu0 %v258_v0 }
  0x2a   :  { %175 = vmatpush3.msra.mxu0 %v42_v8 }
  0x2b   :  { %177 = vmatmul.mubr.msk.f32.vlgmr.msra.gmra.mxu0 %vm57_vm1, %v41_v9 }
  0xeb   :  { %v127_v11 = vpop.f32.mrf.mxu0 }
  0xec   :  { %v128_v12 = vadd.f32 %v149_v10, %v127_v11 }
  0xed   :  { %v178_v13 = vpop.f32.mrf.mxu0 }
  0xee   :  { %186 = vtanh.f32 %v128_v12 }
  0xfb   :  { %v187_v14 = vpop.eup %186 }
  0xfc   :  { %132 = vst [vmem:[#allocation7] sm:$0xff] %v187_v14 }
  0xfd   :  { %239 = shalt.err (!%p236_p0)
}
  0xfe   :  { %142 = dma.vmem_to_hbm [thread:$0]  %s140_s25, 128, %s296_s3, [#allocation4]  }
  0xff   :  { %252 = dma.done.wait [#allocation4], 128  }
 0x100   :  { %253 = vsyncadd [#allocation4], 4294967168 }
 0x101   :  { %146 = vsyncpa [#allocation3], 1 }
 0x102   :  { %147 = vsyncpa [#allocation6], 1 }
 0x103   :  { %148 = vsyncpa [#allocation4], 1 }

</bundles_post_ra>
